<compile_context>
chip_gen: v6e
topology: v6e:2x2x1
jax: 0.10.0
libtpu: 0.0.40
codegen_flags: <defaults>
</compile_context>

<pallas_src>
import functools

import jax
import jax.numpy as jnp
from jax.experimental import pallas as pl
from jax.experimental.pallas import tpu as pltpu

HIDDEN = 256
NEG_SLOPE = 0.01  # PyTorch nn.LeakyReLU default negative_slope


def _round_up(n, m):
    return ((n + m - 1) // m) * m


def _supports_buffered():
    """One-time capability probe (outside jit) for BlockSpec(pipeline_mode=pl.Buffered)."""
    try:
        pl.BlockSpec((8, 128), lambda i: (0, 0), pipeline_mode=pl.Buffered(1))
        return True
    except (AttributeError, TypeError):
        return False


_HAS_BUFFERED = _supports_buffered()


def _invariant_spec(shape):
    """Grid-invariant (weight/bias) block: resident across steps, single-buffered."""
    if _HAS_BUFFERED:
        return pl.BlockSpec(shape, lambda i: (0, 0), pipeline_mode=pl.Buffered(1))
    return pl.BlockSpec(shape, lambda i: (0, 0))


def _mlp_kernel(x_ref, w1_ref, b1_ref, w2_ref, b2_ref, o_ref):
    # x_ref : (bb, G) input dtype   w1_ref: (G, H) compute dtype   b1_ref: (1, H) f32
    # w2_ref: (H, G) compute dtype  b2_ref: (1, G) f32             o_ref : (bb, G) out dtype
    # Cast the activation tile in-kernel (no extra wrapper-side HBM pass over x).
    x = x_ref[...].astype(w1_ref.dtype)
    h = jnp.dot(x, w1_ref[...], preferred_element_type=jnp.float32) + b1_ref[...]
    h = jnp.where(h > 0, h, NEG_SLOPE * h)                       # LeakyReLU(0.01)
    h = h.astype(w2_ref.dtype)                                   # back to MXU dtype
    out = jnp.dot(h, w2_ref[...], preferred_element_type=jnp.float32) + b2_ref[...]
    o_ref[...] = out.astype(o_ref.dtype)


@functools.partial(jax.jit, static_argnames=("block_b", "compute_dtype"))
def _forward_impl(x, w1, b1, w2, b2, *, block_b, compute_dtype):
    B, G = x.shape
    H = w1.shape[1]
    out_dtype = x.dtype
    cdt = jnp.dtype(compute_dtype)

    # Batch tile: multiple of 16 (bf16 packs (16,128) per vreg) and, when B allows,
    # at least 2 grid steps so "parallel" can shard the batch over v7x's 2 TCs.
    bb = max(16, min(_round_up(block_b, 16), _round_up(pl.cdiv(B, 2), 16)))
    grid = (pl.cdiv(B, bb),)

    # Only the tiny weights/biases are cast in the wrapper; x stays untouched.
    w1c = w1.astype(cdt)
    b1c = b1.reshape(1, H).astype(jnp.float32)
    w2c = w2.astype(cdt)
    b2c = b2.reshape(1, G).astype(jnp.float32)

    # VMEM budget from actual buffer sizes (+headroom); v7x has only 64 MiB physical.
    wbuf = 1 if _HAS_BUFFERED else 2
    vmem_need = (
        wbuf * 2 * G * H * cdt.itemsize                       # w1, w2 (resident)
        + wbuf * (H + G) * 4                                  # b1, b2
        + 2 * bb * G * x.dtype.itemsize                       # x double buffer
        + 2 * bb * G * jnp.dtype(out_dtype).itemsize          # out double buffer
    )
    vmem_limit = max(int(vmem_need * 1.5) + (4 << 20), 16 << 20)
    # TODO(synk): for very large num_genes (resident bf16 weights > ~20 MiB), add a
    # trailing "arbitrary" grid axis tiling G with an f32 VMEM accumulator instead of
    # keeping both full weight matrices resident (required to fit v7x's 64 MiB VMEM).

    cost = pl.CostEstimate(
        flops=4 * B * G * H,                                   # two (B,G)x(G,H)-class matmuls
        transcendentals=0,
        bytes_accessed=(
            B * G * x.dtype.itemsize                           # x (read once)
            + 2 * G * H * cdt.itemsize                         # w1 + w2
            + (H + G) * 4                                      # biases
            + B * G * jnp.dtype(out_dtype).itemsize            # out (written once)
        ),
    )

    return pl.pallas_call(
        _mlp_kernel,
        out_shape=jax.ShapeDtypeStruct((B, G), out_dtype),
        grid_spec=pltpu.PrefetchScalarGridSpec(
            num_scalar_prefetch=0,
            grid=grid,
            in_specs=[
                pl.BlockSpec((bb, G), lambda i: (i, 0)),       # x tile (original dtype)
                _invariant_spec((G, H)),                       # w1 (resident)
                _invariant_spec((1, H)),                       # b1
                _invariant_spec((H, G)),                       # w2 (resident)
                _invariant_spec((1, G)),                       # b2
            ],
            out_specs=pl.BlockSpec((bb, G), lambda i: (i, 0)),
        ),
        compiler_params=pltpu.CompilerParams(
            dimension_semantics=("parallel",),
            vmem_limit_bytes=vmem_limit,
        ),
        cost_estimate=cost,
    )(x, w1c, b1c, w2c, b2c)


def diffusion_model_forward(x, t, w1, b1, w2, b2, *, block_b=512,
                            compute_dtype=jnp.bfloat16):
    """Pallas forward pass. `t` is accepted (and ignored) to match the PyTorch API."""
    del t
    return _forward_impl(x, w1, b1, w2, b2, block_b=block_b,
                         compute_dtype=compute_dtype)


def init_params(key, num_genes, hidden=HIDDEN, dtype=jnp.float32):
    """Deterministic init mimicking nn.Linear's uniform(-1/sqrt(fan_in), +)."""
    k1, k2, k3, k4 = jax.random.split(key, 4)
    bound1 = 1.0 / (num_genes ** 0.5)
    bound2 = 1.0 / (hidden ** 0.5)
    # stored as (in, out) so the kernel does x @ w
    w1 = jax.random.uniform(k1, (num_genes, hidden), dtype, -bound1, bound1)
    b1 = jax.random.uniform(k2, (hidden,), dtype, -bound1, bound1)
    w2 = jax.random.uniform(k3, (hidden, num_genes), dtype, -bound2, bound2)
    b2 = jax.random.uniform(k4, (num_genes,), dtype, -bound2, bound2)
    return w1, b1, w2, b2


def reference_forward(x, w1, b1, w2, b2, compute_dtype=jnp.float32):
    cdt = jnp.dtype(compute_dtype)
    h = jnp.dot(x.astype(cdt), w1.astype(cdt),
                preferred_element_type=jnp.float32) + b1.reshape(1, -1)
    h = jnp.where(h > 0, h, NEG_SLOPE * h)
    out = jnp.dot(h.astype(cdt), w2.astype(cdt),
                  preferred_element_type=jnp.float32) + b2.reshape(1, -1)
    return out


if __name__ == "__main__":
    num_genes = 200   # intentionally NOT a multiple of 128 (exercises unpadded lane dim)
    batch = 50        # intentionally ragged (exercises partial-block handling)

    key = jax.random.PRNGKey(0)
    kx, kt, kp = jax.random.split(key, 3)

    x = jax.random.normal(kx, (batch, num_genes), jnp.float32)
    t = jax.random.randint(kt, (batch,), 0, 1000)     # ignored, as in PyTorch
    w1, b1, w2, b2 = init_params(kp, num_genes)

    ref_f32 = reference_forward(x, w1, b1, w2, b2)

    # Exact-semantics check: f32 compute path vs f32 reference (validation only;
    # the fast/default path below is bf16 MXU inputs + f32 accumulation).
    out_f32 = jax.block_until_ready(
        diffusion_model_forward(x, t, w1, b1, w2, b2, compute_dtype=jnp.float32))
    assert out_f32.shape == (batch, num_genes)
    assert out_f32.dtype == x.dtype
    assert jnp.allclose(out_f32, ref_f32, atol=1e-4, rtol=1e-4), "f32 mismatch"

    # Fast path (default): bf16 MXU inputs, f32 accumulation, output in x.dtype.
    out_bf16 = jax.block_until_ready(diffusion_model_forward(x, t, w1, b1, w2, b2))
    assert out_bf16.shape == (batch, num_genes)
    assert jnp.allclose(out_bf16, ref_f32, atol=5e-2, rtol=5e-2), "bf16 path drifted"
    ref_bf16 = reference_forward(x, w1, b1, w2, b2, jnp.bfloat16)
    assert jnp.allclose(out_bf16, ref_bf16, atol=2e-3, rtol=2e-3), "bf16 mismatch"

    print("KERNEL_OK")
</pallas_src>

<mosaic_0001>
module attributes {stable_mosaic.version = 11 : i64} {
  func.func @_mlp_kernel(%arg0: i32, %arg1: memref<32x200xf32, #tpu.memory_space<vmem>>, %arg2: memref<200x256xf32, #tpu.memory_space<vmem>>, %arg3: memref<1x256xf32, #tpu.memory_space<vmem>>, %arg4: memref<256x200xf32, #tpu.memory_space<vmem>>, %arg5: memref<1x200xf32, #tpu.memory_space<vmem>>, %arg6: memref<32x200xf32, #tpu.memory_space<vmem>>) attributes {dimension_semantics = [#tpu.dimension_semantics<parallel>], iteration_bounds = array<i64: 2>, scalar_prefetch = 0 : i64, scratch_operands = 0 : i64, tpu.core_type = #tpu.core_type<tc>, window_params = [{transform_indices = @transform_0, window_bounds = array<i64: 32, 200>}, {pipeline_mode = #tpu.pipeline_mode<synchronous>, transform_indices = @transform_1, window_bounds = array<i64: 200, 256>}, {pipeline_mode = #tpu.pipeline_mode<synchronous>, transform_indices = @transform_2, window_bounds = array<i64: 1, 256>}, {pipeline_mode = #tpu.pipeline_mode<synchronous>, transform_indices = @transform_3, window_bounds = array<i64: 256, 200>}, {pipeline_mode = #tpu.pipeline_mode<synchronous>, transform_indices = @transform_4, window_bounds = array<i64: 1, 200>}, {transform_indices = @transform_5, window_bounds = array<i64: 32, 200>}]} {
    %c0 = arith.constant 0 : index
    %c0_0 = arith.constant 0 : index
    %0 = vector.load %arg1[%c0, %c0_0] : memref<32x200xf32, #tpu.memory_space<vmem>>, vector<32x200xf32>
    %c0_1 = arith.constant 0 : index
    %c0_2 = arith.constant 0 : index
    %1 = vector.load %arg2[%c0_1, %c0_2] : memref<200x256xf32, #tpu.memory_space<vmem>>, vector<200x256xf32>
    %cst = arith.constant dense<0.000000e+00> : vector<32x256xf32>
    %2 = tpu.matmul %0, %1, %cst {dimension_numbers = #tpu.dot_dimension_numbers<[1], [0], [0], [1], [0, 0, 1, 1], [], []>} : vector<32x200xf32>, vector<200x256xf32>, vector<32x256xf32> -> vector<32x256xf32>
    %c0_3 = arith.constant 0 : index
    %c0_4 = arith.constant 0 : index
    %3 = vector.load %arg3[%c0_3, %c0_4] : memref<1x256xf32, #tpu.memory_space<vmem>>, vector<1x256xf32>
    %4 = vector.broadcast %3 : vector<1x256xf32> to vector<32x256xf32>
    %5 = arith.addf %2, %4 : vector<32x256xf32>
    %cst_5 = arith.constant 0.000000e+00 : f32
    %6 = vector.broadcast %cst_5 : f32 to vector<32x256xf32>
    %7 = arith.cmpf ogt, %5, %6 : vector<32x256xf32>
    %cst_6 = arith.constant 0.00999999977 : f32
    %8 = vector.broadcast %cst_6 : f32 to vector<32x256xf32>
    %9 = arith.mulf %8, %5 : vector<32x256xf32>
    %10 = arith.select %7, %5, %9 : vector<32x256xi1>, vector<32x256xf32>
    %c0_7 = arith.constant 0 : index
    %c0_8 = arith.constant 0 : index
    %11 = vector.load %arg4[%c0_7, %c0_8] : memref<256x200xf32, #tpu.memory_space<vmem>>, vector<256x200xf32>
    %cst_9 = arith.constant dense<0.000000e+00> : vector<32x200xf32>
    %12 = tpu.matmul %10, %11, %cst_9 {dimension_numbers = #tpu.dot_dimension_numbers<[1], [0], [0], [1], [0, 0, 1, 1], [], []>} : vector<32x256xf32>, vector<256x200xf32>, vector<32x200xf32> -> vector<32x200xf32>
    %c0_10 = arith.constant 0 : index
    %c0_11 = arith.constant 0 : index
    %13 = vector.load %arg5[%c0_10, %c0_11] : memref<1x200xf32, #tpu.memory_space<vmem>>, vector<1x200xf32>
    %14 = vector.broadcast %13 : vector<1x200xf32> to vector<32x200xf32>
    %15 = arith.addf %12, %14 : vector<32x200xf32>
    %c0_12 = arith.constant 0 : index
    %c0_13 = arith.constant 0 : index
    %16 = vector.load %arg6[%c0_12, %c0_13] : memref<32x200xf32, #tpu.memory_space<vmem>>, vector<32x200xf32>
    tpu.vector_store %arg6[%c0_12, %c0_13], %15 {strides = array<i32>} : memref<32x200xf32, #tpu.memory_space<vmem>>, vector<32x200xf32>,
    return
  }
  func.func @transform_0(%arg0: i32) -> (i32, i32) {
    %c0_i32 = arith.constant 0 : i32
    %c0_i32_0 = arith.constant 0 : i32
    return %arg0, %c0_i32 : i32, i32
  }
  func.func @transform_1(%arg0: i32) -> (i32, i32) {
    %c0_i32 = arith.constant 0 : i32
    %c0_i32_0 = arith.constant 0 : i32
    %c0_i32_1 = arith.constant 0 : i32
    return %c0_i32, %c0_i32_0 : i32, i32
  }
  func.func @transform_2(%arg0: i32) -> (i32, i32) {
    %c0_i32 = arith.constant 0 : i32
    %c0_i32_0 = arith.constant 0 : i32
    %c0_i32_1 = arith.constant 0 : i32
    return %c0_i32, %c0_i32_0 : i32, i32
  }
  func.func @transform_3(%arg0: i32) -> (i32, i32) {
    %c0_i32 = arith.constant 0 : i32
    %c0_i32_0 = arith.constant 0 : i32
    %c0_i32_1 = arith.constant 0 : i32
    return %c0_i32, %c0_i32_0 : i32, i32
  }
  func.func @transform_4(%arg0: i32) -> (i32, i32) {
    %c0_i32 = arith.constant 0 : i32
    %c0_i32_0 = arith.constant 0 : i32
    %c0_i32_1 = arith.constant 0 : i32
    return %c0_i32, %c0_i32_0 : i32, i32
  }
  func.func @transform_5(%arg0: i32) -> (i32, i32) {
    %c0_i32 = arith.constant 0 : i32
    %c0_i32_0 = arith.constant 0 : i32
    return %arg0, %c0_i32 : i32, i32
  }
}

</mosaic_0001>

<bundles_post_ra>
// kernel: _forward_impl.1
= control target key start
LH: loop header
LB: loop body
LE: loop exit
PB: predicated region body
PF: predicated region fallthrough
CT: control target
= control target key end

     0   :  { %10 = vsyncpa [#allocation3], 0  ;;  %s1371_s0 = inlined_call_operand.vmem [shape: f32[50,200], index: 0, kind: input, shape index: {}]   ;;  %s1372_s1 = inlined_call_operand.vmem [shape: f32[200,256], index: 1, kind: input, shape index: {}]   ;;  %s1373_s2 = inlined_call_operand.vmem [shape: f32[1,256], index: 2, kind: input, shape index: {}]   ;;  %s1374_s3 = inlined_call_operand.vmem [shape: f32[256,200], index: 3, kind: input, shape index: {}]   ;;  %s1375_s4 = inlined_call_operand.vmem [shape: f32[1,200], index: 4, kind: input, shape index: {}]   ;;  %s1376_s5 = inlined_call_operand.hbm [shape: f32[50,200], index: 5, kind: output, shape index: {}]  }
   0x1   :  { %12 = vsyncpa [#allocation3 + $0x1], 0  ;;  %s874_s18 = smov 0   ;;  %s876_s19 = smov 0  }
   0x2   :  { %s878_s20 = smov 0   ;;  %s880_s21 = smov 0  }
   0x3 LB: > { %s895_s22 = sadd.s32 4294967295, %s839_s21   ;;  %s712_s23 = sadd.s32 4294967294, %s839_s21   ;;  %s839_s21 = sphi %s880_s21, %s1382_s21   ;;  %s835_s20 = sphi %s878_s20, %s1381_s20   ;;  %s831_s19 = sphi %s876_s19, %s1380_s19   ;;  %s827_s18 = sphi %s874_s18, %s1379_s18  }
   0x4   : > { %s899_s24 = sadd.s32 1, %s839_s21   ;;  %s135_s25 = sadd.s32 1, %s835_s20 }
   0x5   : > { %s132_s26 = ssub.s32 %s839_s21, %s899_s24  ;;  %p145_p0 = scmp.ne.s32.totalorder %s835_s20, %s831_s19 }
   0x6   : > { %p133_p1 = scmp.eq.s32.totalorder %s132_s26, 0  ;;  %p146_p2 = scmp.eq.s32.totalorder %s895_s22, 1 }
   0x7   : > { %p151_p3 = scmp.ne.s32.totalorder %s831_s19, %s827_s18  ;;  %p152_p4 = scmp.eq.s32.totalorder %s712_s23, 1 }
   0x8   : > { %s910_s27 = scalar_select %p133_p1, %s835_s20, %s135_s25  }
   0x9   : > { %p912_p5 = por %p146_p2, %p145_p0  ;;  %p916_p6 = por %p152_p4, %p151_p3 }
   0xa   : > { %p715_p7 = scmp.ge.s32.totalorder %s839_s21, 1  ;;  %p202_p8 = scmp.lt.s32.totalorder %s839_s21, 3 }
   0xc   : > { %p203_p9 = pnand %p715_p7, %p202_p8 }
   0xd   : > { %s932_s11 = sshll.u32 (!%p203_p9), %s895_s22, 2  ;;  %s233_s12 = sand.u32 (!%p203_p9), 1, %s831_s19  }
   0xe   : > { %206 = sbr.rel (%p203_p9) target bundleno = 508 (0x1fc), region = 40  ;;  %p242_p10 = scmp.lt.s32.totalorder (!%p203_p9), %s932_s11, 6 }
   0xf   : > { %s716_s15 = sshll.u32 (!%p203_p9), %s233_s12, 6  ;;  %s1311_s17 = scalar_lea.sflag (!%p203_p9), [#allocation3], %s233_s12 }
  0x10   : > { %s1295_s16 = scalar_lea.vmem (!%p203_p9), [#allocation2], %s716_s15 }
  0x13   : > { %v298_v0 = vld [vmem:[%s1372_s1 + $0xf8] sm:$0xff]  ;;  %v297_v1 = vld [vmem:[%s1372_s1 + $0xf0] sm:$0xff]  ;;  %v296_v2 = vld [vmem:[%s1372_s1 + $0xe8] sm:$0xff]  ;;  %s243_s8 = scalar_select %p242_p10, %s932_s11, 6  ;;  %vm329_vm0 = vcmask 588800  }
  0x14   : > { %342 = vmatprep.subr.mxu0 %v298_v0  ;;  %v295_v3 = vld [vmem:[%s1372_s1 + $0xe0] sm:$0xff]  ;;  %v294_v4 = vld [vmem:[%s1372_s1 + $0xd8] sm:$0xff]  ;;  %v293_v5 = vld [vmem:[%s1372_s1 + $0xd0] sm:$0xff]  ;;  %s637_s25 = ssub.s32 (%p912_p5), 7, %s932_s11 }
  0x15   : > { %343 = vmatpush1.msra.mxu0 %v297_v1  ;;  %v292_v6 = vld [vmem:[%s1372_s1 + $0xc8] sm:$0xff]  ;;  %v291_v7 = vld [vmem:[%s1372_s1 + $0xc0] sm:$0xff]  ;;  %v290_v8 = vld [vmem:[%s1372_s1 + $0xb8] sm:$0xff]  ;;  %s735_s23 = sshll.u32 %s243_s8, 4  ;;  %p638_p11 = scmp.lt.s32.totalorder (%p912_p5), %s637_s25, 4 }
  0x16   : > { %344 = vmatprep.subr.mxu0 %v296_v2  ;;  %v289_v9 = vld [vmem:[%s1372_s1 + $0xb0] sm:$0xff]  ;;  %v288_v10 = vld [vmem:[%s1372_s1 + $0xa8] sm:$0xff]  ;;  %v287_v11 = vld [vmem:[%s1372_s1 + $0xa0] sm:$0xff]  ;;  %s978_s13 = scalar_lea.vmem %s1371_s0, %s735_s23 }
  0x17   : > { %345 = vmatpush1.msra.mxu0 %v295_v3  ;;  %v286_v12 = vld [vmem:[%s1372_s1 + $0x98] sm:$0xff]  ;;  %v285_v13 = vld [vmem:[%s1372_s1 + $0x90] sm:$0xff]  ;;  %v284_v14 = vld [vmem:[%s1372_s1 + $0x88] sm:$0xff] }
  0x18   : > { %346 = vmatprep.subr.mxu0 %v294_v4  ;;  %v283_v15 = vld [vmem:[%s1372_s1 + $0x80] sm:$0xff]  ;;  %v282_v16 = vld [vmem:[%s1372_s1 + $0x78] sm:$0xff]  ;;  %v281_v17 = vld [vmem:[%s1372_s1 + $0x70] sm:$0xff] }
  0x19   : > { %347 = vmatpush1.msra.mxu0 %v293_v5  ;;  %v280_v18 = vld [vmem:[%s1372_s1 + $0x68] sm:$0xff]  ;;  %v279_v20 = vld [vmem:[%s1372_s1 + $0x60] sm:$0xff]  ;;  %v278_v21 = vld [vmem:[%s1372_s1 + $0x58] sm:$0xff] }
  0x1a   : > { %348 = vmatprep.subr.mxu0 %v292_v6  ;;  %v260_v19 = vld [vmem:[%s978_s13 + $0x8] sm:$0xff]  ;;  %v277_v22 = vld [vmem:[%s1372_s1 + $0x50] sm:$0xff]  ;;  %v486_v23 = vld [vmem:[%s1374_s3 + $0xf8] sm:$0xff] }
  0x1b   : > { %349 = vmatpush1.msra.mxu0 %v291_v7  ;;  %720 = vmatprep.mubr.msk.f32.mxu0 %vm329_vm0, %v260_v19  ;;  %v485_v24 = vld [vmem:[%s1374_s3 + $0xf0] sm:$0xff]  ;;  %v276_v25 = vld [vmem:[%s1372_s1 + $0x48] sm:$0xff]  ;;  %v483_v27 = vld [vmem:[%s1374_s3 + $0xe0] sm:$0xff] }
  0x1c   : > { %350 = vmatprep.subr.mxu0 %v290_v8  ;;  %531 = vmatprep.subr.mxu1 %v486_v23  ;;  %v484_v26 = vld [vmem:[%s1374_s3 + $0xe8] sm:$0xff]  ;;  %v275_v28 = vld [vmem:[%s1372_s1 + $0x40] sm:$0xff]  ;;  %v482_v29 = vld [vmem:[%s1374_s3 + $0xd8] sm:$0xff] }
  0x1d   : > { %351 = vmatpush1.msra.mxu0 %v289_v9  ;;  %532 = vmatpush1.msra.mxu1 %v485_v24  ;;  %v274_v30 = vld [vmem:[%s1372_s1 + $0x38] sm:$0xff]  ;;  %v481_v31 = vld [vmem:[%s1374_s3 + $0xd0] sm:$0xff]  ;;  %v480_v33 = vld [vmem:[%s1374_s3 + $0xc8] sm:$0xff] }
  0x1e   : > { %352 = vmatprep.subr.mxu0 %v288_v10  ;;  %533 = vmatprep.subr.mxu1 %v484_v26  ;;  %v273_v32 = vld [vmem:[%s1372_s1 + $0x30] sm:$0xff]  ;;  %v272_v34 = vld [vmem:[%s1372_s1 + $0x28] sm:$0xff]  ;;  %v479_v35 = vld [vmem:[%s1374_s3 + $0xc0] sm:$0xff] }
  0x1f   : > { %353 = vmatpush1.msra.mxu0 %v287_v11  ;;  %534 = vmatpush1.msra.mxu1 %v483_v27  ;;  %v271_v36 = vld [vmem:[%s1372_s1 + $0x20] sm:$0xff]  ;;  %v478_v37 = vld [vmem:[%s1374_s3 + $0xb8] sm:$0xff]  ;;  %v477_v39 = vld [vmem:[%s1374_s3 + $0xb0] sm:$0xff] }
  0x20   : > { %354 = vmatprep.subr.mxu0 %v286_v12  ;;  %535 = vmatprep.subr.mxu1 %v482_v29  ;;  %v270_v38 = vld [vmem:[%s1372_s1 + $0x18] sm:$0xff]  ;;  %v269_v40 = vld [vmem:[%s1372_s1 + $0x10] sm:$0xff]  ;;  %v476_v41 = vld [vmem:[%s1374_s3 + $0xa8] sm:$0xff] }
  0x21   : > { %355 = vmatpush1.msra.mxu0 %v285_v13  ;;  %536 = vmatpush1.msra.mxu1 %v481_v31  ;;  %v268_v42 = vld [vmem:[%s1372_s1 + $0x8] sm:$0xff]  ;;  %v475_v43 = vld [vmem:[%s1374_s3 + $0xa0] sm:$0xff]  ;;  %v474_v45 = vld [vmem:[%s1374_s3 + $0x98] sm:$0xff] }
  0x22   : > { %356 = vmatprep.subr.mxu0 %v284_v14  ;;  %537 = vmatprep.subr.mxu1 %v480_v33  ;;  %v267_v44 = vld [vmem:[%s1372_s1] sm:$0xff]  ;;  %v316_v46 = vld [vmem:[%s1372_s1 + $0x188] sm:$0xff]  ;;  %v473_v47 = vld [vmem:[%s1374_s3 + $0x90] sm:$0xff] }
  0x23   : > { %357 = vmatpush1.msra.mxu0 %v283_v15  ;;  %538 = vmatpush1.msra.mxu1 %v479_v35  ;;  %v315_v48 = vld [vmem:[%s1372_s1 + $0x180] sm:$0xff]  ;;  %v472_v49 = vld [vmem:[%s1374_s3 + $0x88] sm:$0xff]  ;;  %v314_v50 = vld [vmem:[%s1372_s1 + $0x178] sm:$0xff] }
  0x24   : > { %358 = vmatprep.subr.mxu0 %v282_v16  ;;  %539 = vmatprep.subr.mxu1 %v478_v37  ;;  %v471_v51 = vld [vmem:[%s1374_s3 + $0x80] sm:$0xff]  ;;  %v313_v52 = vld [vmem:[%s1372_s1 + $0x170] sm:$0xff]  ;;  %v470_v53 = vld [vmem:[%s1374_s3 + $0x78] sm:$0xff] }
  0x25   : > { %359 = vmatpush1.msra.mxu0 %v281_v17  ;;  %540 = vmatpush1.msra.mxu1 %v477_v39  ;;  %v312_v54 = vld [vmem:[%s1372_s1 + $0x168] sm:$0xff]  ;;  %v469_v55 = vld [vmem:[%s1374_s3 + $0x70] sm:$0xff]  ;;  %v311_v56 = vld [vmem:[%s1372_s1 + $0x160] sm:$0xff] }
  0x26   : > { %360 = vmatprep.subr.mxu0 %v280_v18  ;;  %541 = vmatprep.subr.mxu1 %v476_v41  ;;  %v468_v57 = vld [vmem:[%s1374_s3 + $0x68] sm:$0xff]  ;;  %v310_v58 = vld [vmem:[%s1372_s1 + $0x158] sm:$0xff]  ;;  %v467_v59 = vld [vmem:[%s1374_s3 + $0x60] sm:$0xff] }
  0x27   : > { %361 = vmatpush1.msra.mxu0 %v279_v20  ;;  %542 = vmatpush1.msra.mxu1 %v475_v43  ;;  %v309_v60 = vld [vmem:[%s1372_s1 + $0x150] sm:$0xff]  ;;  %v466_v61 = vld [vmem:[%s1374_s3 + $0x58] sm:$0xff]  ;;  %v308_v62 = vld [vmem:[%s1372_s1 + $0x148] sm:$0xff] }
  0x28   : > { %362 = vmatprep.subr.mxu0 %v278_v21  ;;  %543 = vmatprep.subr.mxu1 %v474_v45  ;;  %v465_v63 = vld [vmem:[%s1374_s3 + $0x50] sm:$0xff]  ;;  %v307_v0 = vld [vmem:[%s1372_s1 + $0x140] sm:$0xff]  ;;  %v464_v1 = vld [vmem:[%s1374_s3 + $0x48] sm:$0xff] }
  0x29   : > { %363 = vmatpush1.msra.mxu0 %v277_v22  ;;  %544 = vmatpush1.msra.mxu1 %v473_v47  ;;  %v306_v2 = vld [vmem:[%s1372_s1 + $0x138] sm:$0xff]  ;;  %v463_v3 = vld [vmem:[%s1374_s3 + $0x40] sm:$0xff]  ;;  %v305_v4 = vld [vmem:[%s1372_s1 + $0x130] sm:$0xff] }
  0x2a   : > { %364 = vmatprep.subr.mxu0 %v276_v25  ;;  %545 = vmatprep.subr.mxu1 %v472_v49  ;;  %v462_v5 = vld [vmem:[%s1374_s3 + $0x38] sm:$0xff]  ;;  %v304_v6 = vld [vmem:[%s1372_s1 + $0x128] sm:$0xff]  ;;  %v461_v7 = vld [vmem:[%s1374_s3 + $0x30] sm:$0xff] }
  0x2b   : > { %365 = vmatpush1.msra.mxu0 %v275_v28  ;;  %546 = vmatpush1.msra.mxu1 %v471_v51  ;;  %v303_v8 = vld [vmem:[%s1372_s1 + $0x120] sm:$0xff]  ;;  %v460_v9 = vld [vmem:[%s1374_s3 + $0x28] sm:$0xff]  ;;  %v302_v10 = vld [vmem:[%s1372_s1 + $0x118] sm:$0xff] }
  0x2c   : > { %366 = vmatprep.subr.mxu0 %v274_v30  ;;  %547 = vmatprep.subr.mxu1 %v470_v53  ;;  %v459_v11 = vld [vmem:[%s1374_s3 + $0x20] sm:$0xff]  ;;  %v301_v12 = vld [vmem:[%s1372_s1 + $0x110] sm:$0xff]  ;;  %v458_v13 = vld [vmem:[%s1374_s3 + $0x18] sm:$0xff] }
  0x2d   : > { %367 = vmatpush1.msra.mxu0 %v273_v32  ;;  %548 = vmatpush1.msra.mxu1 %v469_v55  ;;  %v300_v14 = vld [vmem:[%s1372_s1 + $0x108] sm:$0xff]  ;;  %v457_v15 = vld [vmem:[%s1374_s3 + $0x10] sm:$0xff]  ;;  %v299_v16 = vld [vmem:[%s1372_s1 + $0x100] sm:$0xff] }
  0x2e   : > { %368 = vmatprep.subr.mxu0 %v272_v34  ;;  %549 = vmatprep.subr.mxu1 %v468_v57  ;;  %v456_v17 = vld [vmem:[%s1374_s3 + $0x8] sm:$0xff]  ;;  %v259_v18 = vld [vmem:[%s978_s13] sm:$0xff]  ;;  %v262_v20 = vld [vmem:[%s978_s13 + $0x18] sm:$0xff] }
  0x2f   : > { %369 = vmatpush1.msra.mxu0 %v271_v36  ;;  %550 = vmatpush1.msra.mxu1 %v467_v59  ;;  %v455_v19 = vld [vmem:[%s1374_s3] sm:$0xff]  ;;  %v518_v21 = vld [vmem:[%s1374_s3 + $0x1f8] sm:$0xff]  ;;  %v517_v22 = vld [vmem:[%s1374_s3 + $0x1f0] sm:$0xff] }
  0x30   : > { %370 = vmatprep.subr.mxu0 %v270_v38  ;;  %551 = vmatprep.subr.mxu1 %v466_v61  ;;  %v516_v23 = vld [vmem:[%s1374_s3 + $0x1e8] sm:$0xff]  ;;  %v261_v24 = vld [vmem:[%s978_s13 + $0x10] sm:$0xff]  ;;  %v515_v25 = vld [vmem:[%s1374_s3 + $0x1e0] sm:$0xff] }
  0x31   : > { %371 = vmatpush1.msra.mxu0 %v269_v40  ;;  %552 = vmatpush1.msra.mxu1 %v465_v63  ;;  %v264_v26 = vld [vmem:[%s978_s13 + $0x28] sm:$0xff]  ;;  %v514_v27 = vld [vmem:[%s1374_s3 + $0x1d8] sm:$0xff]  ;;  %v513_v28 = vld [vmem:[%s1374_s3 + $0x1d0] sm:$0xff] }
  0x32   : > { %372 = vmatprep.subr.mxu0 %v268_v42  ;;  %553 = vmatprep.subr.mxu1 %v464_v1  ;;  %v512_v29 = vld [vmem:[%s1374_s3 + $0x1c8] sm:$0xff]  ;;  %v263_v30 = vld [vmem:[%s978_s13 + $0x20] sm:$0xff]  ;;  %v266_v32 = vld [vmem:[%s978_s13 + $0x38] sm:$0xff] }
  0x33   : > { %373 = vmatpush1.msra.mxu0 %v267_v44  ;;  %554 = vmatpush1.msra.mxu1 %v463_v3  ;;  %v511_v31 = vld [vmem:[%s1374_s3 + $0x1c0] sm:$0xff]  ;;  %v510_v33 = vld [vmem:[%s1374_s3 + $0x1b8] sm:$0xff]  ;;  %v509_v34 = vld [vmem:[%s1374_s3 + $0x1b0] sm:$0xff] }
  0x34   : > { %388 = vmatprep.subr.mxu0 %v316_v46  ;;  %555 = vmatprep.subr.mxu1 %v462_v5  ;;  %v508_v35 = vld [vmem:[%s1374_s3 + $0x1a8] sm:$0xff]  ;;  %v265_v36 = vld [vmem:[%s978_s13 + $0x30] sm:$0xff]  ;;  %v507_v37 = vld [vmem:[%s1374_s3 + $0x1a0] sm:$0xff] }
  0x35   : > { %389 = vmatpush2.msra.mxu0 %v315_v48  ;;  %556 = vmatpush1.msra.mxu1 %v461_v7  ;;  %v506_v38 = vld [vmem:[%s1374_s3 + $0x198] sm:$0xff]  ;;  %v505_v39 = vld [vmem:[%s1374_s3 + $0x190] sm:$0xff]  ;;  %v504_v40 = vld [vmem:[%s1374_s3 + $0x188] sm:$0xff] }
  0x36   : > { %390 = vmatprep.subr.mxu0 %v314_v50  ;;  %557 = vmatprep.subr.mxu1 %v460_v9  ;;  %v503_v41 = vld [vmem:[%s1374_s3 + $0x180] sm:$0xff]  ;;  %v502_v42 = vld [vmem:[%s1374_s3 + $0x178] sm:$0xff]  ;;  %v501_v43 = vld [vmem:[%s1374_s3 + $0x170] sm:$0xff] }
  0x37   : > { %391 = vmatpush2.msra.mxu0 %v313_v52  ;;  %558 = vmatpush1.msra.mxu1 %v459_v11  ;;  %v500_v44 = vld [vmem:[%s1374_s3 + $0x168] sm:$0xff]  ;;  %v499_v45 = vld [vmem:[%s1374_s3 + $0x160] sm:$0xff]  ;;  %v498_v46 = vld [vmem:[%s1374_s3 + $0x158] sm:$0xff] }
  0x38   : > { %392 = vmatprep.subr.mxu0 %v312_v54  ;;  %559 = vmatprep.subr.mxu1 %v458_v13  ;;  %v497_v47 = vld [vmem:[%s1374_s3 + $0x150] sm:$0xff]  ;;  %v496_v48 = vld [vmem:[%s1374_s3 + $0x148] sm:$0xff]  ;;  %v495_v49 = vld [vmem:[%s1374_s3 + $0x140] sm:$0xff] }
  0x39   : > { %393 = vmatpush2.msra.mxu0 %v311_v56  ;;  %560 = vmatpush1.msra.mxu1 %v457_v15  ;;  %v494_v50 = vld [vmem:[%s1374_s3 + $0x138] sm:$0xff]  ;;  %v493_v51 = vld [vmem:[%s1374_s3 + $0x130] sm:$0xff]  ;;  %v492_v52 = vld [vmem:[%s1374_s3 + $0x128] sm:$0xff] }
  0x3a   : > { %394 = vmatprep.subr.mxu0 %v310_v58  ;;  %561 = vmatprep.subr.mxu1 %v456_v17  ;;  %v491_v53 = vld [vmem:[%s1374_s3 + $0x120] sm:$0xff]  ;;  %v490_v54 = vld [vmem:[%s1374_s3 + $0x118] sm:$0xff]  ;;  %v489_v55 = vld [vmem:[%s1374_s3 + $0x110] sm:$0xff]  ;;  %v319_v58 = vlaneseq }
  0x3b   : > { %395 = vmatpush2.msra.mxu0 %v309_v60  ;;  %562 = vmatpush1.msra.mxu1 %v455_v19  ;;  %v488_v56 = vld [vmem:[%s1374_s3 + $0x108] sm:$0xff]  ;;  %v487_v57 = vld [vmem:[%s1374_s3 + $0x100] sm:$0xff] }
  0x3c   : > { %396 = vmatprep.subr.mxu0 %v308_v62  ;;  %563 = vmatprep.subr.mxu1 %v518_v21  ;;  %v320_v59 = vshrl.u32 %v319_v58, 7  ;;  %v317_v61 = vld [vmem:[%s1373_s2] sm:$0x3] }
  0x3d   : > { %397 = vmatpush2.msra.mxu0 %v307_v0  ;;  %564 = vmatpush2.msra.mxu1 %v517_v22 }
  0x3e   : > { %398 = vmatprep.subr.mxu0 %v306_v2  ;;  %565 = vmatprep.subr.mxu1 %v516_v23  ;;  %v321_v60 = vsub.s32 0, %v320_v59  ;;  %v325_v62 = vsub.s32 1, %v320_v59 }
  0x3f   : > { %399 = vmatpush2.msra.mxu0 %v305_v4  ;;  %566 = vmatpush2.msra.mxu1 %v515_v25 }
  0x40   : > { %400 = vmatprep.subr.mxu0 %v304_v6  ;;  %567 = vmatprep.subr.mxu1 %v514_v27  ;;  %v322_v63 = vrot.slane %v317_v61, %v321_v60  ;;  %v326_v0 = vrot.slane %v317_v61, %v325_v62 }
  0x41   : > { %401 = vmatpush2.msra.mxu0 %v303_v8  ;;  %568 = vmatpush2.msra.mxu1 %v513_v28 }
  0x42   : > { %402 = vmatprep.subr.mxu0 %v302_v10  ;;  %569 = vmatprep.subr.mxu1 %v512_v29 }
  0x43   : > { %403 = vmatpush2.msra.mxu0 %v301_v12  ;;  %570 = vmatpush2.msra.mxu1 %v511_v31 }
  0x44   : > { %404 = vmatprep.subr.mxu0 %v300_v14  ;;  %571 = vmatprep.subr.mxu1 %v510_v33  ;;  %v519_v33 = vld [vmem:[%s1375_s4] sm:$0x3] }
  0x45   : > { %405 = vmatpush2.msra.mxu0 %v299_v16  ;;  %572 = vmatpush2.msra.mxu1 %v509_v34  ;;  %v524_v34 = vrot.slane %v519_v33, %v321_v60 }
  0x46   : > { %407 = vmatmul.mubr.f32.vlgmr.msra.gmra.mxu0 %v259_v18  ;;  %573 = vmatprep.subr.mxu1 %v508_v35  ;;  %v528_v35 = vrot.slane %v519_v33, %v325_v62 }
  0x47   : > { %721 = vmatprep.mubr.msk.f32.mxu0 %vm329_vm0, %v262_v20  ;;  %574 = vmatpush2.msra.mxu1 %v507_v37 }
  0x48   : > { %575 = vmatprep.subr.mxu1 %v506_v38 }
  0x49   : > { %576 = vmatpush2.msra.mxu1 %v505_v39 }
  0x4a   : > { %413 = vmatmul.mubr.f32.gmra.mxu0 %v261_v24  ;;  %577 = vmatprep.subr.mxu1 %v504_v40 }
  0x4b   : > { %722 = vmatprep.mubr.msk.f32.mxu0 %vm329_vm0, %v264_v26  ;;  %578 = vmatpush2.msra.mxu1 %v503_v41 }
  0x4c   : > { %579 = vmatprep.subr.mxu1 %v502_v42 }
  0x4d   : > { %580 = vmatpush2.msra.mxu1 %v501_v43 }
  0x4e   : > { %419 = vmatmul.mubr.f32.gmra.mxu0 %v263_v30  ;;  %581 = vmatprep.subr.mxu1 %v500_v44 }
  0x4f   : > { %723 = vmatprep.mubr.msk.f32.mxu0 %vm329_vm0, %v266_v32  ;;  %582 = vmatpush2.msra.mxu1 %v499_v45 }
  0x50   : > { %583 = vmatprep.subr.mxu1 %v498_v46 }
  0x51   : > { %584 = vmatpush2.msra.mxu1 %v497_v47 }
  0x52   : > { %425 = vmatmul.mubr.f32.gmra.mxu0 %v265_v36  ;;  %585 = vmatprep.subr.mxu1 %v496_v48 }
  0x53   : > { %586 = vmatpush2.msra.mxu1 %v495_v49 }
  0x54   : > { %587 = vmatprep.subr.mxu1 %v494_v50 }
  0x55   : > { %588 = vmatpush2.msra.mxu1 %v493_v51 }
  0x56   : > { %589 = vmatprep.subr.mxu1 %v492_v52 }
  0x57   : > { %590 = vmatpush2.msra.mxu1 %v491_v53 }
  0x58   : > { %591 = vmatprep.subr.mxu1 %v490_v54 }
  0x59   : > { %592 = vmatpush2.msra.mxu1 %v489_v55 }
  0x5a   : > { %593 = vmatprep.subr.mxu1 %v488_v56 }
  0x5b   : > { %594 = vmatpush2.msra.mxu1 %v487_v57 }
 0x106   : > { %v408_v1 = vpop.f32.mrf.mxu0 }
 0x107   : > { %v409_v2 = vadd.f32 %v408_v1, %v322_v63 }
 0x108   : > { %v410_v3 = vpop.f32.mrf.mxu0 }
 0x109   : > { %v411_v4 = vadd.f32 %v410_v3, %v326_v0  ;;  %v439_v5 = vmul.f32 0.01, %v409_v2  ;;  %vm431_vm2 = vcmp.gt.f32.partialorder %v409_v2, 0.0 }
 0x10a   : > { %v414_v6 = vpop.f32.mrf.mxu0 }
 0x10b   : > { %v415_v7 = vadd.f32 %v414_v6, %v322_v63  ;;  %vm432_vm1 = vcmp.gt.f32.partialorder %v411_v4, 0.0  ;;  %v440_v8 = vmul.f32 0.01, %v411_v4  ;;  %v447_v14 = vsel %vm431_vm2, %v409_v2, %v439_v5 }
 0x10c   : > { %v416_v9 = vpop.f32.mrf.mxu0 }
 0x10d   : > { %v417_v10 = vadd.f32 %v416_v9, %v326_v0  ;;  %v448_v11 = vsel %vm432_vm1, %v411_v4, %v440_v8  ;;  %v441_v12 = vmul.f32 0.01, %v415_v7  ;;  %vm433_vm4 = vcmp.gt.f32.partialorder %v415_v7, 0.0 }
 0x10e   : > { %v420_v13 = vpop.f32.mrf.mxu0  ;;  %595 = vmatprep.mubr.f32.mxu1 %v448_v11 }
 0x10f   : > { %v442_v15 = vmul.f32 0.01, %v417_v10  ;;  %v421_v16 = vadd.f32 %v420_v13, %v322_v63  ;;  %596 = vmatmul.mubr.f32.vlgmr.msra.gmra.mxu1 %v447_v14  ;;  %vm434_vm3 = vcmp.gt.f32.partialorder %v417_v10, 0.0  ;;  %v449_v22 = vsel %vm433_vm4, %v415_v7, %v441_v12 }
 0x110   : > { %v422_v17 = vpop.f32.mrf.mxu0 }
 0x111   : > { %v423_v18 = vadd.f32 %v422_v17, %v326_v0  ;;  %v450_v19 = vsel %vm434_vm3, %v417_v10, %v442_v15  ;;  %v443_v20 = vmul.f32 0.01, %v421_v16  ;;  %vm435_vm6 = vcmp.gt.f32.partialorder %v421_v16, 0.0 }
 0x112   : > { %v426_v21 = vpop.f32.mrf.mxu0  ;;  %601 = vmatprep.mubr.f32.mxu1 %v450_v19 }
 0x113   : > { %v444_v23 = vmul.f32 0.01, %v423_v18  ;;  %v427_v24 = vadd.f32 %v426_v21, %v322_v63  ;;  %602 = vmatmul.mubr.f32.gmra.mxu1 %v449_v22  ;;  %vm436_vm5 = vcmp.gt.f32.partialorder %v423_v18, 0.0  ;;  %v451_v29 = vsel %vm435_vm6, %v421_v16, %v443_v20 }
 0x114   : > { %v428_v25 = vpop.f32.mrf.mxu0 }
 0x115   : > { %v429_v26 = vadd.f32 %v428_v25, %v326_v0  ;;  %v452_v27 = vsel %vm436_vm5, %v423_v18, %v444_v23  ;;  %v445_v28 = vmul.f32 0.01, %v427_v24  ;;  %vm437_vm8 = vcmp.gt.f32.partialorder %v427_v24, 0.0 }
 0x116   : > { %607 = vmatprep.mubr.f32.mxu1 %v452_v27 }
 0x117   : > { %v446_v30 = vmul.f32 0.01, %v429_v26  ;;  %608 = vmatmul.mubr.f32.gmra.mxu1 %v451_v29  ;;  %vm438_vm7 = vcmp.gt.f32.partialorder %v429_v26, 0.0  ;;  %v453_v32 = vsel %vm437_vm8, %v427_v24, %v445_v28 }
 0x119   : > { %v454_v31 = vsel %vm438_vm7, %v429_v26, %v446_v30 }
 0x11a   : > { %613 = vmatprep.mubr.f32.mxu1 %v454_v31 }
 0x11b   : > { %614 = vmatmul.mubr.f32.gmra.mxu1 %v453_v32 }
 0x1cf   : > { %v597_v36 = vpop.f32.mrf.mxu1 }
 0x1d0   : > { %v598_v37 = vadd.f32 %v597_v36, %v524_v34 }
 0x1d1   : > { %v599_v38 = vpop.f32.mrf.mxu1 }
 0x1d2   : > { %620 = vst [vmem:[%s1295_s16] sm:$0xff] %v598_v37  ;;  %v600_v39 = vadd.f32 %v599_v38, %v528_v35 }
 0x1d3   : > { %v603_v40 = vpop.f32.mrf.mxu1 }
 0x1d4   : > { %621 = vst.msk [vmem:[%s1295_s16 + $0x8] sm:$0xff] %vm329_vm0, %v600_v39  ;;  %v604_v41 = vadd.f32 %v603_v40, %v524_v34 }
 0x1d5   : > { %v605_v42 = vpop.f32.mrf.mxu1 }
 0x1d6   : > { %622 = vst [vmem:[%s1295_s16 + $0x10] sm:$0xff] %v604_v41  ;;  %v606_v43 = vadd.f32 %v605_v42, %v528_v35 }
 0x1d7   : > { %v609_v44 = vpop.f32.mrf.mxu1 }
 0x1d8   : > { %623 = vst.msk [vmem:[%s1295_s16 + $0x18] sm:$0xff] %vm329_vm0, %v606_v43  ;;  %v610_v45 = vadd.f32 %v609_v44, %v524_v34 }
 0x1d9   : > { %v611_v46 = vpop.f32.mrf.mxu1 }
 0x1da   : > { %624 = vst [vmem:[%s1295_s16 + $0x20] sm:$0xff] %v610_v45  ;;  %v612_v47 = vadd.f32 %v611_v46, %v528_v35 }
 0x1db   : > { %v615_v48 = vpop.f32.mrf.mxu1 }
 0x1dc   : > { %625 = vst.msk [vmem:[%s1295_s16 + $0x28] sm:$0xff] %vm329_vm0, %v612_v47  ;;  %v616_v49 = vadd.f32 %v615_v48, %v524_v34  ;;  %635 = sbr.rel (!%p912_p5) target bundleno = 508 (0x1fc), region = 44 }
 0x1dd   : > { %v617_v50 = vpop.f32.mrf.mxu1 }
 0x1de   : > { %626 = vst [vmem:[%s1295_s16 + $0x30] sm:$0xff] %v616_v49  ;;  %v618_v51 = vadd.f32 %v617_v50, %v528_v35 }
 0x1e0   : > { %627 = vst.msk [vmem:[%s1295_s16 + $0x38] sm:$0xff] %vm329_vm0, %v618_v51 }
 0x1e1   : > { %s1384_s25 = smov (!%p638_p11, %s637_s25), 4 }
 0x1e2   : > { %s1316_s23 = sshll.u32 %s1384_s25, 8 }
 0x1e3   : > { %s643_s26 = ssub.s32 1024, %s1316_s23 }
 0x1e4   : > { %644 = vsyncadd %s1311_s17, %s643_s26  ;;  %p728_p12 = scmp.ne.s32.totalorder %s1316_s23, 0  ;;  %s738_s13 = sshll.u32 %s895_s22, 10 }
 0x1e5   : > { %s1325_s6 = scalar_lea.hbm %s1376_s5, %s738_s13  ;;  %s650_s11 = sshll.u32 %s1295_s16, 4  ;;  %s1328_s11 = int_to_ptr.vmem [resolvable:$true] %s650_s11 }
 0x1e6   : > { %s779_s7 = scalar_lea.vmem %s1328_s11, %s1316_s23  ;;  %s841_s9 = smov [#allocation2]  }
 0x1e7   : > { %p780_p13 = scmp.ne.s32.totalorder %s1328_s11, %s779_s7  ;;  %s783_s10 = sshll.u32 %s841_s9, 4  ;;  %s784_s10 = int_to_ptr.vmem [resolvable:$false] %s783_s10 }
 0x1e8   : > { %s785_s22 = scalar_lea.vmem %s784_s10, 2048  ;;  %p786_p2 = scmp.lt.s32.totalorder %s1328_s11, %s784_s10 }
 0x1e9   : > { %p781_p0 = pnand %p780_p13, %p728_p12  ;;  %p787_p3 = scmp.lt.s32.totalorder %s785_s22, %s779_s7 }
 0x1eb   : > { %p782_p1 = pneg %p781_p0  ;;  %p788_p4 = por %p787_p3, %p786_p2 }
 0x1ed   : > { %p789_p5 = pnand %p788_p4, %p782_p1 }
 0x1ef   : > { %792 = shalt.err (!%p789_p5)
}
 0x1f0   : > { %s793_s12 = scalar_lea.hbm %s1325_s6, %s1316_s23  ;;  %s797_s15 = scalar_lea.hbm %s1376_s5, 1792 }
 0x1f1   : > { %p794_p7 = scmp.ne.s32.totalorder %s1325_s6, %s793_s12  ;;  %p798_p10 = scmp.lt.s32.totalorder %s1325_s6, %s1376_s5 }
 0x1f2   : > { %p799_p11 = scmp.lt.s32.totalorder %s797_s15, %s793_s12 }
 0x1f3   : > { %p795_p8 = pnand %p794_p7, %p728_p12 }
 0x1f4   : > { %p800_p13 = por %p799_p11, %p798_p10 }
 0x1f5   : > { %p796_p9 = pneg %p795_p8 }
 0x1f7   : > { %p801_p0 = pnand %p800_p13, %p796_p9 }
 0x1f9   : > { %804 = shalt.err (!%p801_p0)
}
 0x1fa   : > { %s842_s26 = smov 256   ;;  %s843_s13 = smov 16  }
 0x1fb   : > { %656 = dma.vmem_to_hbm [thread:$0]  (%p728_p12), %s1328_s11, %s1316_s23, %s1325_s6, %s1311_s17, %s842_s26, %s842_s26, %s843_s13  }
 0x1fc PF: > { %p744_p1 = scmp.ge.s32.totalorder %s839_s21, 2  ;;  %s665_s30 = sand.u32 1, %s827_s18  }
 0x1fd   : > { %s666_s28 = scalar_lea.sflag [#allocation3], %s665_s30 }
 0x1fe   : > { %p741_p2 = pnand %p744_p1, %p916_p6 }
 0x200   : > { %p742_p3 = pneg %p741_p2 }
 0x202   : > { %822 = dma.done.wait (%p742_p3), %s666_s28, 1024  }
 0x203   : > { %824 = vsyncadd (%p742_p3), %s666_s28, 4294966272  ;;  %p15_p4 = scmp.ge.s32.totalorder %s899_s24, 4   ;;  %s1379_s18 = smov %s831_s19 }
 0x204   : > { %s1380_s19 = smov %s835_s20  ;;  %s1381_s20 = smov %s910_s27 }
 0x205   : > { %s1382_s21 = smov %s899_s24  ;;  %17 = sbr.rel (!%p15_p4) target bundleno = 3 (0x3), region = 75 }
 0x20a   :  { %671 = vsyncpa [#allocation3], 1 }
 0x20b   :  { %673 = vsyncpa [#allocation3 + $0x1], 1 }

</bundles_post_ra>
